<compile_context>
chip_gen: v7x
topology: tpu7x:2x2x1
jax: 0.10.0
libtpu: 0.0.40
codegen_flags: <defaults>
</compile_context>

<pallas_src>
import functools

import jax
import jax.numpy as jnp
from jax.experimental import pallas as pl
from jax.experimental.pallas import tpu as pltpu

_LANE = 128


def _project3d_kernel(P_ref, pts_ref, out_ref, *, eps):
    # P_ref:   SMEM (B, 12)       flattened, pre-scaled (B, 3, 4) projection
    # pts_ref: VMEM (1, 4, R, 128) tile of homogeneous points
    # out_ref: VMEM (1, 2, R, 128) tile of normalized pixel coordinates
    b = pl.program_id(0)

    # Hoist all 12 scalar reads once per tile.
    p00 = P_ref[b, 0]
    p01 = P_ref[b, 1]
    p02 = P_ref[b, 2]
    p03 = P_ref[b, 3]
    p10 = P_ref[b, 4]
    p11 = P_ref[b, 5]
    p12 = P_ref[b, 6]
    p13 = P_ref[b, 7]
    p20 = P_ref[b, 8]
    p21 = P_ref[b, 9]
    p22 = P_ref[b, 10]
    p23 = P_ref[b, 11]

    # Dense (1, R, 128) slabs per homogeneous coordinate.
    x = pts_ref[:, 0]
    y = pts_ref[:, 1]
    z = pts_ref[:, 2]
    w = pts_ref[:, 3]

    # Rows 0/1 of P are pre-scaled by 2/(W-1), 2/(H-1) on the host.
    cam_x = p00 * x + p01 * y + p02 * z + p03 * w
    cam_y = p10 * x + p11 * y + p12 * z + p13 * w
    cam_z = p20 * x + p21 * y + p22 * z + p23 * w

    inv = 1.0 / (cam_z + eps)  # exact divide: keeps 1e-4 tolerance

    out_ref[:, 0] = cam_x * inv - 1.0
    out_ref[:, 1] = cam_y * inv - 1.0


def project3d(points, K, T, batch_size, height, width, eps=1e-7, tile_lanes=16384):
    """points: (B, 4, H*W); K, T: (B, 4, 4). Returns (B, H, W, 2)."""
    B = batch_size
    N = height * width
    assert points.shape == (B, 4, N)

    # ---- host glue: tiny 4x4 matmul + fold normalization into P ----------
    P = jnp.matmul(K, T, precision=jax.lax.Precision.HIGHEST)[:, :3, :]  # (B, 3, 4)
    scale = jnp.array(
        [2.0 / (width - 1), 2.0 / (height - 1), 1.0], dtype=jnp.float32
    ).reshape(1, 3, 1)
    P_flat = (P.astype(jnp.float32) * scale).reshape(B, 12)

    # ---- tiling: fold N into (sublane R, lane 128) --------------------------
    rt_needed = pl.cdiv(N, _LANE)
    r_max = max(8, tile_lanes // _LANE)
    if rt_needed <= r_max:
        R = rt_needed                 # single tile along N (full-dim block is legal)
        Rt = rt_needed
    else:
        R = (r_max // 8) * 8          # multiple of 8 -> satisfies (8,128) tiling
        Rt = pl.cdiv(rt_needed, R) * R
    Npad = Rt * _LANE

    pts = points.astype(jnp.float32)
    if Npad != N:
        pts = jnp.pad(pts, ((0, 0), (0, 0), (0, Npad - N)))
    pts = pts.reshape(B, 4, Rt, _LANE)

    kernel = functools.partial(_project3d_kernel, eps=float(eps))

    out = pl.pallas_call(
        kernel,
        out_shape=jax.ShapeDtypeStruct((B, 2, Rt, _LANE), jnp.float32),
        grid=(B, Rt // R),
        in_specs=[
            pl.BlockSpec(memory_space=pltpu.MemorySpace.SMEM),            # P scalars
            pl.BlockSpec((1, 4, R, _LANE), lambda b, n: (b, 0, n, 0)),    # points
        ],
        out_specs=pl.BlockSpec((1, 2, R, _LANE), lambda b, n: (b, 0, n, 0)),
        compiler_params=pltpu.CompilerParams(
            dimension_semantics=("parallel", "parallel")
        ),
    )(P_flat, pts)

    # ---- host glue: back to PyTorch output layout (B, H, W, 2) -------------
    pix = out.reshape(B, 2, Npad)[:, :, :N].reshape(B, 2, height, width)
    # TODO(synk): if downstream consumers accept channel-first (B,2,H,W), drop
    # this transpose to save ~2/3 extra HBM traffic.
    pix = jnp.transpose(pix, (0, 2, 3, 1))
    return pix


def _reference(points, K, T, B, H, W, eps=1e-7):
    P = jnp.matmul(K, T, precision=jax.lax.Precision.HIGHEST)[:, :3, :]
    cam = jnp.matmul(P, points, precision=jax.lax.Precision.HIGHEST)
    pix = cam[:, :2, :] / (cam[:, 2:3, :] + eps)
    pix = pix.reshape(B, 2, H, W).transpose(0, 2, 3, 1)
    pix = pix.at[..., 0].divide(W - 1)
    pix = pix.at[..., 1].divide(H - 1)
    return (pix - 0.5) * 2


if __name__ == "__main__":
    key = jax.random.PRNGKey(0)
    B, H, W = 2, 16, 16
    N = H * W

    kx, ky, kz, kt = jax.random.split(key, 4)

    # Well-conditioned synthetic camera geometry (depth bounded away from 0).
    x = jax.random.normal(kx, (B, 1, N), dtype=jnp.float32)
    y = jax.random.normal(ky, (B, 1, N), dtype=jnp.float32)
    z = jax.random.uniform(kz, (B, 1, N), dtype=jnp.float32, minval=1.0, maxval=3.0)
    ones = jnp.ones((B, 1, N), dtype=jnp.float32)
    points = jnp.concatenate([x, y, z, ones], axis=1)  # (B, 4, N)

    # Pinhole intrinsics (4x4), deterministic.
    K = jnp.tile(
        jnp.array(
            [
                [W / 2.0, 0.0, W / 2.0, 0.0],
                [0.0, H / 2.0, H / 2.0, 0.0],
                [0.0, 0.0, 1.0, 0.0],
                [0.0, 0.0, 0.0, 1.0],
            ],
            dtype=jnp.float32,
        )[None],
        (B, 1, 1),
    )

    # Extrinsics: identity rotation + small random translation.
    trans = 0.1 * jax.random.normal(kt, (B, 3), dtype=jnp.float32)
    T = jnp.tile(jnp.eye(4, dtype=jnp.float32)[None], (B, 1, 1))
    T = T.at[:, :3, 3].set(trans)

    out = project3d(points, K, T, B, H, W)
    out = jax.block_until_ready(out)

    ref = _reference(points, K, T, B, H, W)
    assert out.shape == (B, H, W, 2)
    assert jnp.allclose(out, ref, atol=1e-4, rtol=1e-4)

    print("KERNEL_OK")
</pallas_src>

<mosaic_0001>
module attributes {stable_mosaic.version = 11 : i64} {
  func.func @_project3d_kernel(%arg0: i32, %arg1: i32, %arg2: memref<2x12xf32, #tpu.memory_space<smem>>, %arg3: memref<1x4x2x128xf32, #tpu.memory_space<vmem>>, %arg4: memref<1x2x2x128xf32, #tpu.memory_space<vmem>>) attributes {dimension_semantics = [#tpu.dimension_semantics<parallel>, #tpu.dimension_semantics<parallel>], iteration_bounds = array<i64: 2, 1>, scalar_prefetch = 0 : i64, scratch_operands = 0 : i64, tpu.core_type = #tpu.core_type<tc>, window_params = [{transform_indices = @transform_0, window_bounds = array<i64: 2, 12>}, {transform_indices = @transform_1, window_bounds = array<i64: 1, 4, 2, 128>}, {transform_indices = @transform_2, window_bounds = array<i64: 1, 2, 2, 128>}]} {
    %0 = arith.index_cast %arg0 : i32 to index
    %c0 = arith.constant 0 : index
    %1 = memref.load %arg2[%0, %c0] : memref<2x12xf32, #tpu.memory_space<smem>>
    %2 = arith.index_cast %arg0 : i32 to index
    %c1 = arith.constant 1 : index
    %3 = memref.load %arg2[%2, %c1] : memref<2x12xf32, #tpu.memory_space<smem>>
    %4 = arith.index_cast %arg0 : i32 to index
    %c2 = arith.constant 2 : index
    %5 = memref.load %arg2[%4, %c2] : memref<2x12xf32, #tpu.memory_space<smem>>
    %6 = arith.index_cast %arg0 : i32 to index
    %c3 = arith.constant 3 : index
    %7 = memref.load %arg2[%6, %c3] : memref<2x12xf32, #tpu.memory_space<smem>>
    %8 = arith.index_cast %arg0 : i32 to index
    %c4 = arith.constant 4 : index
    %9 = memref.load %arg2[%8, %c4] : memref<2x12xf32, #tpu.memory_space<smem>>
    %10 = arith.index_cast %arg0 : i32 to index
    %c5 = arith.constant 5 : index
    %11 = memref.load %arg2[%10, %c5] : memref<2x12xf32, #tpu.memory_space<smem>>
    %12 = arith.index_cast %arg0 : i32 to index
    %c6 = arith.constant 6 : index
    %13 = memref.load %arg2[%12, %c6] : memref<2x12xf32, #tpu.memory_space<smem>>
    %14 = arith.index_cast %arg0 : i32 to index
    %c7 = arith.constant 7 : index
    %15 = memref.load %arg2[%14, %c7] : memref<2x12xf32, #tpu.memory_space<smem>>
    %16 = arith.index_cast %arg0 : i32 to index
    %c8 = arith.constant 8 : index
    %17 = memref.load %arg2[%16, %c8] : memref<2x12xf32, #tpu.memory_space<smem>>
    %18 = arith.index_cast %arg0 : i32 to index
    %c9 = arith.constant 9 : index
    %19 = memref.load %arg2[%18, %c9] : memref<2x12xf32, #tpu.memory_space<smem>>
    %20 = arith.index_cast %arg0 : i32 to index
    %c10 = arith.constant 10 : index
    %21 = memref.load %arg2[%20, %c10] : memref<2x12xf32, #tpu.memory_space<smem>>
    %22 = arith.index_cast %arg0 : i32 to index
    %c11 = arith.constant 11 : index
    %23 = memref.load %arg2[%22, %c11] : memref<2x12xf32, #tpu.memory_space<smem>>
    %c0_0 = arith.constant 0 : index
    %c0_1 = arith.constant 0 : index
    %c0_2 = arith.constant 0 : index
    %c0_3 = arith.constant 0 : index
    %24 = vector.load %arg3[%c0_0, %c0_1, %c0_2, %c0_3] : memref<1x4x2x128xf32, #tpu.memory_space<vmem>>, vector<1x1x2x128xf32>
    %25 = vector.shape_cast %24 : vector<1x1x2x128xf32> to vector<1x2x128xf32>
    %c0_4 = arith.constant 0 : index
    %c1_5 = arith.constant 1 : index
    %c0_6 = arith.constant 0 : index
    %c0_7 = arith.constant 0 : index
    %26 = vector.load %arg3[%c0_4, %c1_5, %c0_6, %c0_7] : memref<1x4x2x128xf32, #tpu.memory_space<vmem>>, vector<1x1x2x128xf32>
    %27 = vector.shape_cast %26 : vector<1x1x2x128xf32> to vector<1x2x128xf32>
    %c0_8 = arith.constant 0 : index
    %c2_9 = arith.constant 2 : index
    %c0_10 = arith.constant 0 : index
    %c0_11 = arith.constant 0 : index
    %28 = vector.load %arg3[%c0_8, %c2_9, %c0_10, %c0_11] : memref<1x4x2x128xf32, #tpu.memory_space<vmem>>, vector<1x1x2x128xf32>
    %29 = vector.shape_cast %28 : vector<1x1x2x128xf32> to vector<1x2x128xf32>
    %c0_12 = arith.constant 0 : index
    %c3_13 = arith.constant 3 : index
    %c0_14 = arith.constant 0 : index
    %c0_15 = arith.constant 0 : index
    %30 = vector.load %arg3[%c0_12, %c3_13, %c0_14, %c0_15] : memref<1x4x2x128xf32, #tpu.memory_space<vmem>>, vector<1x1x2x128xf32>
    %31 = vector.shape_cast %30 : vector<1x1x2x128xf32> to vector<1x2x128xf32>
    %32 = vector.broadcast %1 : f32 to vector<1x2x128xf32>
    %33 = arith.mulf %32, %25 : vector<1x2x128xf32>
    %34 = vector.broadcast %3 : f32 to vector<1x2x128xf32>
    %35 = arith.mulf %34, %27 : vector<1x2x128xf32>
    %36 = arith.addf %33, %35 : vector<1x2x128xf32>
    %37 = vector.broadcast %5 : f32 to vector<1x2x128xf32>
    %38 = arith.mulf %37, %29 : vector<1x2x128xf32>
    %39 = arith.addf %36, %38 : vector<1x2x128xf32>
    %40 = vector.broadcast %7 : f32 to vector<1x2x128xf32>
    %41 = arith.mulf %40, %31 : vector<1x2x128xf32>
    %42 = arith.addf %39, %41 : vector<1x2x128xf32>
    %43 = vector.broadcast %9 : f32 to vector<1x2x128xf32>
    %44 = arith.mulf %43, %25 : vector<1x2x128xf32>
    %45 = vector.broadcast %11 : f32 to vector<1x2x128xf32>
    %46 = arith.mulf %45, %27 : vector<1x2x128xf32>
    %47 = arith.addf %44, %46 : vector<1x2x128xf32>
    %48 = vector.broadcast %13 : f32 to vector<1x2x128xf32>
    %49 = arith.mulf %48, %29 : vector<1x2x128xf32>
    %50 = arith.addf %47, %49 : vector<1x2x128xf32>
    %51 = vector.broadcast %15 : f32 to vector<1x2x128xf32>
    %52 = arith.mulf %51, %31 : vector<1x2x128xf32>
    %53 = arith.addf %50, %52 : vector<1x2x128xf32>
    %54 = vector.broadcast %17 : f32 to vector<1x2x128xf32>
    %55 = arith.mulf %54, %25 : vector<1x2x128xf32>
    %56 = vector.broadcast %19 : f32 to vector<1x2x128xf32>
    %57 = arith.mulf %56, %27 : vector<1x2x128xf32>
    %58 = arith.addf %55, %57 : vector<1x2x128xf32>
    %59 = vector.broadcast %21 : f32 to vector<1x2x128xf32>
    %60 = arith.mulf %59, %29 : vector<1x2x128xf32>
    %61 = arith.addf %58, %60 : vector<1x2x128xf32>
    %62 = vector.broadcast %23 : f32 to vector<1x2x128xf32>
    %63 = arith.mulf %62, %31 : vector<1x2x128xf32>
    %64 = arith.addf %61, %63 : vector<1x2x128xf32>
    %cst = arith.constant 1.000000e-07 : f32
    %65 = vector.broadcast %cst : f32 to vector<1x2x128xf32>
    %66 = arith.addf %64, %65 : vector<1x2x128xf32>
    %cst_16 = arith.constant 1.000000e+00 : f32
    %67 = vector.broadcast %cst_16 : f32 to vector<1x2x128xf32>
    %68 = arith.divf %67, %66 : vector<1x2x128xf32>
    %69 = arith.mulf %42, %68 : vector<1x2x128xf32>
    %cst_17 = arith.constant 1.000000e+00 : f32
    %70 = vector.broadcast %cst_17 : f32 to vector<1x2x128xf32>
    %71 = arith.subf %69, %70 : vector<1x2x128xf32>
    %c0_18 = arith.constant 0 : index
    %c0_19 = arith.constant 0 : index
    %c0_20 = arith.constant 0 : index
    %c0_21 = arith.constant 0 : index
    %72 = vector.load %arg4[%c0_18, %c0_19, %c0_20, %c0_21] : memref<1x2x2x128xf32, #tpu.memory_space<vmem>>, vector<1x1x2x128xf32>
    %73 = vector.shape_cast %72 : vector<1x1x2x128xf32> to vector<1x2x128xf32>
    %74 = vector.shape_cast %71 : vector<1x2x128xf32> to vector<1x1x2x128xf32>
    tpu.vector_store %arg4[%c0_18, %c0_19, %c0_20, %c0_21], %74 {strides = array<i32>} : memref<1x2x2x128xf32, #tpu.memory_space<vmem>>, vector<1x1x2x128xf32>,
    %75 = arith.mulf %53, %68 : vector<1x2x128xf32>
    %cst_22 = arith.constant 1.000000e+00 : f32
    %76 = vector.broadcast %cst_22 : f32 to vector<1x2x128xf32>
    %77 = arith.subf %75, %76 : vector<1x2x128xf32>
    %c0_23 = arith.constant 0 : index
    %c1_24 = arith.constant 1 : index
    %c0_25 = arith.constant 0 : index
    %c0_26 = arith.constant 0 : index
    %78 = vector.load %arg4[%c0_23, %c1_24, %c0_25, %c0_26] : memref<1x2x2x128xf32, #tpu.memory_space<vmem>>, vector<1x1x2x128xf32>
    %79 = vector.shape_cast %78 : vector<1x1x2x128xf32> to vector<1x2x128xf32>
    %80 = vector.shape_cast %77 : vector<1x2x128xf32> to vector<1x1x2x128xf32>
    tpu.vector_store %arg4[%c0_23, %c1_24, %c0_25, %c0_26], %80 {strides = array<i32>} : memref<1x2x2x128xf32, #tpu.memory_space<vmem>>, vector<1x1x2x128xf32>,
    return
  }
  func.func @transform_0(%arg0: i32, %arg1: i32) -> (i32, i32) {
    %c0_i32 = arith.constant 0 : i32
    %c0_i32_0 = arith.constant 0 : i32
    %c0_i32_1 = arith.constant 0 : i32
    return %c0_i32, %c0_i32_0 : i32, i32
  }
  func.func @transform_1(%arg0: i32, %arg1: i32) -> (i32, i32, i32, i32) {
    %c0_i32 = arith.constant 0 : i32
    %c0_i32_0 = arith.constant 0 : i32
    %c0_i32_1 = arith.constant 0 : i32
    return %arg0, %c0_i32, %arg1, %c0_i32_0 : i32, i32, i32, i32
  }
  func.func @transform_2(%arg0: i32, %arg1: i32) -> (i32, i32, i32, i32) {
    %c0_i32 = arith.constant 0 : i32
    %c0_i32_0 = arith.constant 0 : i32
    %c0_i32_1 = arith.constant 0 : i32
    return %arg0, %c0_i32, %arg1, %c0_i32_0 : i32, i32, i32, i32
  }
}

</mosaic_0001>

<bundles_post_ra>
// kernel: tpu_custom_call.1
= control target key start
LH: loop header
LB: loop body
LE: loop exit
PB: predicated region body
PF: predicated region fallthrough
CT: control target
= control target key end

     0   :  { %s861_s0 = inlined_call_operand.hbm [shape: f32[2,12], index: 0, kind: input, shape index: {}]   ;;  %s862_s1 = inlined_call_operand.hbm [shape: f32[2,4,2,128], index: 1, kind: input, shape index: {}]   ;;  %s863_s2 = inlined_call_operand.hbm [shape: f32[2,2,2,128], index: 2, kind: output, shape index: {}]  }
   0x1   :  { %868 = sst [smem:[#allocation11_spill]] %s861_s0 }
   0x2   :  { %7 = vsyncpa [#allocation5], 0 }
   0x3   :  { %8 = vsyncpa [#allocation3], 0 }
   0x4   :  { %10 = vsyncpa [#allocation3 + $0x1], 0 }
   0x5   :  { %11 = vsyncpa [#allocation4], 0 }
   0x6   :  { %13 = vsyncpa [#allocation4 + $0x1], 0  ;;  %s635_s9 = smov 0   ;;  %s637_s10 = smov 0  }
   0x7   :  { %s639_s11 = smov 0   ;;  %s641_s12 = smov 0  }
   0x8   :  { %s643_s13 = smov 0   ;;  %s645_s14 = smov 0  }
   0x9 LB: > { %s377_s15 = sadd.s32 4294967295, %s611_s14   ;;  %s378_s16 = sadd.s32 4294967294, %s611_s14   ;;  %s611_s14 = sphi %s645_s14, %s19_s14   ;;  %s607_s13 = sphi %s643_s13, %s885_s13   ;;  %s603_s12 = sphi %s641_s12, %s884_s12   ;;  %s599_s11 = sphi %s639_s11, %s883_s11   ;;  %s595_s10 = sphi %s637_s10, %s882_s10   ;;  %s591_s9 = sphi %s635_s9, %s881_s9  }
   0xa   : > { %s61_s17 = sadd.s32 1, %s599_s11  ;;  %p68_p0 = scmp.ne.s32.totalorder %s599_s11, %s595_s10 }
   0xb   : > { %p69_p1 = scmp.eq.s32.totalorder %s611_s14, 0  ;;  %p74_p2 = scmp.ne.s32.totalorder %s595_s10, %s591_s9 }
   0xc   : > { %p673_p3 = scmp.eq.s32.totalorder %s377_s15, 0  ;;  %p100_p4 = scmp.eq.s32.totalorder %s377_s15, 1 }
   0xd   : > { %p70_p5 = por %p69_p1, %p68_p0  ;;  %p106_p6 = scmp.eq.s32.totalorder %s378_s16, 1 }
   0xe   : > { %s869_s18 = scalar_select %p673_p3, 1, 0 }
   0xf   : > { %p679_p7 = por %p673_p3, %p74_p2  ;;  %p683_p8 = por %p100_p4, %p68_p0 }
  0x10   : > { %p687_p9 = por %p106_p6, %p74_p2  ;;  %p379_p10 = scmp.ge.s32.totalorder %s611_s14, 1 }
  0x11   : > { %s870_s19 = scalar_select %p679_p7, 1, 0 }
  0x12   : > { %s871_s20 = scalar_select %p683_p8, 1, 0 }
  0x13   : > { %s872_s21 = scalar_select %p687_p9, 1, 0 }
  0x14   : > { %p113_p11 = scmp.lt.s32.totalorder %s611_s14, 3  ;;  %p424_p1 = scmp.lt.s32.totalorder %s611_s14, 2 }
  0x15   : > { %s135_s23 = sand.u32 1, %s599_s11   ;;  %s31_s25 = sadd.s32 1, %s607_s13 }
  0x16   : > { %p694_p13 = pnand %p379_p10, %p113_p11  ;;  %p702_p0 = pnand %p424_p1, %p70_p5 }
  0x17   : > { %s382_s26 = sshll.u32 %s135_s23, 3  ;;  %p33_p4 = scmp.ge.s32.totalorder %s31_s25, 2 }
  0x18   : > { %p411_p7 = pneg %p694_p13  ;;  %s875_s0 = sld [smem:[#allocation11_spill]] }
  0x1a   : > { %p412_p2 = pnand %p411_p7, %p673_p3 }
  0x1c   : > { %p484_p10 = pneg %p412_p2 }
  0x1e   : > { %s482_s29 = scalar_lea.hbm %s875_s0, 32 }
  0x1f   : > { %p483_p6 = scmp.ne.s32.totalorder %s875_s0, %s482_s29  ;;  %p489_p5 = scmp.lt.u32.totalorder %s482_s29, %s875_s0 }
  0x21   : > { %p485_p11 = pnand %p484_p10, %p483_p6 }
  0x23   : > { %p486_p12 = pneg %p485_p11 }
  0x25   : > { %p491_p1 = pnand %p489_p5, %p486_p12 }
  0x27   : > { %494 = shalt.err (!%p491_p1)
}
  0x28   : > { %s613_s6 = smov [#allocation2]   ;;  %s887_s25 = smov (%p33_p4, %s31_s25), 0 }
  0x29   : > { %414 = dma.hbm_to_smem (!%p412_p2), %s875_s0, 32, %s613_s6, [#allocation5]  }
  0x2a   : > { %s401_s15 = sshll.u32 %s607_s13, 7  ;;  %s56_s16 = ssub.s32 %s607_s13, %s887_s25 }
  0x2b   : > { %s729_s29 = scalar_lea.hbm %s862_s1, %s401_s15  ;;  %p59_p7 = scmp.eq.s32.totalorder %s56_s16, 0 }
  0x2c   : > { %s139_s30 = scalar_lea.vmem [#allocation6], %s382_s26  ;;  %s738_s5 = scalar_lea.sflag [#allocation3], %s135_s23 }
  0x2d   : > { %s147_s3 = sshll.u32 %s139_s30, 4  ;;  %s495_s6 = scalar_lea.hbm %s729_s29, 128  ;;  %s731_s3 = int_to_ptr.vmem [resolvable:$true] %s147_s3 }
  0x2e   : > { %s736_s4 = scalar_select %p59_p7, %s599_s11, %s61_s17  }
  0x2f   : > { %p496_p12 = scmp.ne.s32.totalorder %s729_s29, %s495_s6  ;;  %p497_p2 = pneg %p702_p0 }
  0x30   : > { %s500_s26 = scalar_lea.hbm %s862_s1, 256  ;;  %p501_p10 = scmp.lt.u32.totalorder %s729_s29, %s862_s1 }
  0x31   : > { %p498_p4 = pnand %p497_p2, %p496_p12  ;;  %p502_p11 = scmp.lt.u32.totalorder %s500_s26, %s495_s6 }
  0x32   : > { %p504_p1 = scmp.lt.u32.totalorder %s495_s6, %s729_s29 }
  0x33   : > { %p499_p6 = pneg %p498_p4  ;;  %p503_p5 = por %p502_p11, %p501_p10 }
  0x35   : > { %p505_p7 = por %p504_p1, %p503_p5 }
  0x37   : > { %p506_p9 = pnand %p505_p7, %p499_p6 }
  0x39   : > { %509 = shalt.err (!%p506_p9)
}
  0x3a   : > { %s510_s17 = scalar_lea.vmem %s731_s3, 128  ;;  %s614_s23 = smov [#allocation6]  }
  0x3b   : > { %p511_p12 = scmp.ne.s32.totalorder %s731_s3, %s510_s17  ;;  %s515_s27 = sshll.u32 %s614_s23, 4  ;;  %s516_s27 = int_to_ptr.vmem [resolvable:$false] %s515_s27 }
  0x3c   : > { %s517_s28 = scalar_lea.vmem %s516_s27, 256  ;;  %p518_p3 = scmp.lt.s32.totalorder %s731_s3, %s516_s27 }
  0x3d   : > { %p513_p4 = pnand %p511_p12, %p497_p2  ;;  %p519_p10 = scmp.lt.s32.totalorder %s517_s28, %s510_s17 }
  0x3f   : > { %p514_p8 = pneg %p513_p4  ;;  %p520_p11 = por %p519_p10, %p518_p3 }
  0x41   : > { %p521_p5 = pnand %p520_p11, %p514_p8 }
  0x43   : > { %524 = shalt.err (!%p521_p5)
}
  0x44   : > { %s615_s30 = smov 32   ;;  %s616_s6 = smov 2  }
  0x45   : > { %418 = dma.hbm_to_vmem [thread:$0]  (!%p702_p0), %s729_s29, 128, %s731_s3, %s738_s5, %s615_s30, %s615_s30, %s616_s6  }
  0x46   : > { %159 = sbr.rel (%p694_p13) target bundleno = 135 (0x87), region = 28  ;;  %p876_p9 = scmp.ne.s32.totalorder (!%p694_p13), %s869_s18, 0 }
  0x4d   : > { %578 = dma.done.wait (%p876_p9), [#allocation5], 32  }
  0x4e   : > { %580 = vsyncadd (%p876_p9), [#allocation5], 4294967264  ;;  %s773_s7 = sand.u32 1, %s595_s10   ;;  %p877_p3 = scmp.ne.s32.totalorder %s870_s19, 0 }
  0x4f   : > { %s387_s8 = sshll.u32 %s773_s7, 3  ;;  %s166_s26 = scalar_lea.sflag [#allocation3], %s773_s7 }
  0x50   : > { %s169_s15 = scalar_lea.vmem [#allocation6], %s387_s8 }
  0x51   : > { %582 = dma.done.wait (%p877_p3), %s166_s26, 128  }
  0x52   : > { %584 = vsyncadd (%p877_p3), %s166_s26, 4294967168 }
  0x53   : > { %174 = sfence }
  0x54   : > { %s782_s22 = sshll.u32 %s603_s12, 7  ;;  %v215_v0 = vld [vmem:[%s169_s15] sm:$0x3]  ;;  %v390_v1 = vld [vmem:[%s169_s15 + $0x2] sm:$0x3]  ;;  %p878_p13 = scmp.ne.s32.totalorder %s871_s20, 0 }
  0x55   : > { %s785_s18 = sld [smem:[#allocation2 + %s782_s22]]  ;;  %s193_s24 = sadd.s32 1, %s782_s22  ;;  %v391_v2 = vld [vmem:[%s169_s15 + $0x4] sm:$0x3]  ;;  %v392_v5 = vld [vmem:[%s169_s15 + $0x6] sm:$0x3] }
  0x56   : > { %s207_s29 = sadd.s32 8, %s782_s22  ;;  %s195_s3 = sadd.s32 2, %s782_s22 }
  0x57   : > { %s208_s19 = sld [smem:[#allocation2 + %s207_s29]]  ;;  %s209_s5 = sadd.s32 9, %s782_s22 }
  0x58   : > { %s211_s16 = sadd.s32 10, %s782_s22  ;;  %s210_s17 = sld [smem:[#allocation2 + %s209_s5]] }
  0x59   : > { %s212_s23 = sld [smem:[#allocation2 + %s211_s16]]  ;;  %s213_s28 = sadd.s32 11, %s782_s22 }
  0x5a   : > { %s792_s27 = sld [smem:[#allocation2 + %s193_s24]]  ;;  %s199_s8 = sadd.s32 4, %s782_s22 }
  0x5b   : > { %s795_s30 = sld [smem:[#allocation2 + %s195_s3]]  ;;  %s201_s26 = sadd.s32 5, %s782_s22  ;;  %v222_v11 = vstv %s785_s18 }
  0x5c   : > { %s214_s6 = sld [smem:[#allocation2 + %s213_s28]]  ;;  %s197_s5 = sadd.s32 3, %s782_s22  ;;  %v223_v18 = vmul.f32 %v222_v11, %v215_v0 }
  0x5d   : > { %v244_v3 = vstv %s208_s19  ;;  %s200_s29 = sld [smem:[#allocation2 + %s199_s8]]  ;;  %s203_s16 = sadd.s32 6, %s782_s22 }
  0x5e   : > { %s202_s0 = sld [smem:[#allocation2 + %s201_s26]]  ;;  %v245_v4 = vmul.f32 %v244_v3, %v215_v0  ;;  %v246_v6 = vstv %s210_s17  ;;  %s205_s3 = sadd.s32 7, %s782_s22 }
  0x5f   : > { %v249_v7 = vstv %s212_s23  ;;  %s204_s24 = sld [smem:[#allocation2 + %s203_s16]]  ;;  %v247_v8 = vmul.f32 %v390_v1, %v246_v6  ;;  %s388_s15 = sshll.u32 %s773_s7, 2 }
  0x60   : > { %v250_v9 = vmul.f32 %v391_v2, %v249_v7  ;;  %s198_s28 = sld [smem:[#allocation2 + %s197_s5]]  ;;  %v224_v12 = vstv %s792_s27  ;;  %s402_s18 = sshll.u32 %s603_s12, 6 }
  0x61   : > { %v248_v13 = vadd.f32 %v247_v8, %v245_v4  ;;  %s206_s19 = sld [smem:[#allocation2 + %s205_s3]]  ;;  %v225_v19 = vmul.f32 %v390_v1, %v224_v12  ;;  %v227_v22 = vstv %s795_s30  ;;  %s812_s27 = scalar_lea.hbm %s863_s2, %s402_s18 }
  0x62   : > { %v252_v10 = vstv %s214_s6  ;;  %v228_v27 = vmul.f32 %v391_v2, %v227_v22  ;;  %s266_s30 = scalar_lea.sflag [#allocation4], %s773_s7  ;;  %s617_s12 = smov [#allocation7]  }
  0x63   : > { %v253_v14 = vmul.f32 %v392_v5, %v252_v10  ;;  %v233_v15 = vstv %s200_s29  ;;  %v251_v17 = vadd.f32 %v250_v9, %v248_v13  ;;  %v226_v26 = vadd.f32 %v225_v19, %v223_v18  ;;  %s529_s8 = sshll.u32 %s617_s12, 4  ;;  %s530_s8 = int_to_ptr.vmem [resolvable:$false] %s529_s8 }
  0x64   : > { %v235_v16 = vstv %s202_s0  ;;  %v234_v20 = vmul.f32 %v233_v15, %v215_v0  ;;  %s190_s0 = scalar_lea.vmem [#allocation7], %s388_s15  ;;  %s531_s26 = scalar_lea.vmem %s530_s8, 128 }
  0x65   : > { %v236_v21 = vmul.f32 %v390_v1, %v235_v16  ;;  %v254_v23 = vadd.f32 %v253_v14, %v251_v17  ;;  %v238_v24 = vstv %s204_s24  ;;  %v229_v32 = vadd.f32 %v228_v27, %v226_v26  ;;  %s280_s22 = sshll.u32 %s190_s0, 4  ;;  %s807_s22 = int_to_ptr.vmem [resolvable:$true] %s280_s22 }
  0x66   : > { %v239_v29 = vmul.f32 %v391_v2, %v238_v24  ;;  %v230_v30 = vstv %s198_s28  ;;  %s525_s6 = scalar_lea.vmem %s807_s22, 64  ;;  %p532_p6 = scmp.lt.s32.totalorder %s807_s22, %s530_s8 }
  0x67   : > { %v255_v25 = vadd.f32 1e-07, %v254_v23  ;;  %v237_v28 = vadd.f32 %v236_v21, %v234_v20  ;;  %v241_v31 = vstv %s206_s19  ;;  %v231_v33 = vmul.f32 %v392_v5, %v230_v30  ;;  %p526_p8 = scmp.ne.s32.totalorder %s807_s22, %s525_s6  ;;  %p533_p1 = scmp.lt.s32.totalorder %s531_s26, %s525_s6 }
  0x68   : > { %v242_v35 = vmul.f32 %v392_v5, %v241_v31 }
  0x69   : > { %480 = vrcp.f32 %v255_v25  ;;  %v240_v34 = vadd.f32 %v239_v29, %v237_v28  ;;  %v232_v36 = vadd.f32 %v231_v33, %v229_v32  ;;  %p527_p0 = pnand %p526_p8, %p878_p13  ;;  %p534_p7 = por %p533_p1, %p532_p6 }
  0x6b   : > { %v243_v37 = vadd.f32 %v242_v35, %v240_v34  ;;  %p528_p2 = pneg %p527_p0 }
  0x6d   : > { %p535_p12 = pnand %p534_p7, %p528_p2 }
  0x73   : > { %v481_v38 = vpop.eup %480 }
  0x74   : > { %v258_v39 = vmul.f32 %v481_v38, %v232_v36  ;;  %v261_v40 = vmul.f32 %v481_v38, %v243_v37 }
  0x76   : > { %v393_v41 = vadd.f32 -1.0, %v258_v39  ;;  %v394_v42 = vadd.f32 -1.0, %v261_v40 }
  0x78   : > { %260 = vst [vmem:[%s190_s0] sm:$0x3] %v393_v41  ;;  %395 = vst [vmem:[%s190_s0 + $0x2] sm:$0x3] %v394_v42 }
  0x79   : > { %538 = shalt.err (!%p535_p12)
}
  0x7a   : > { %s539_s29 = scalar_lea.hbm %s812_s27, 64  ;;  %s543_s24 = scalar_lea.hbm %s863_s2, 128 }
  0x7b   : > { %p540_p4 = scmp.ne.s32.totalorder %s812_s27, %s539_s29  ;;  %p544_p5 = scmp.lt.u32.totalorder %s812_s27, %s863_s2 }
  0x7c   : > { %p545_p9 = scmp.lt.u32.totalorder %s543_s24, %s539_s29  ;;  %p547_p8 = scmp.lt.u32.totalorder %s539_s29, %s812_s27 }
  0x7d   : > { %p541_p10 = pnand %p540_p4, %p878_p13 }
  0x7e   : > { %p546_p3 = por %p545_p9, %p544_p5 }
  0x7f   : > { %p542_p11 = pneg %p541_p10 }
  0x80   : > { %p548_p0 = por %p547_p8, %p546_p3 }
  0x82   : > { %p549_p2 = pnand %p548_p0, %p542_p11 }
  0x84   : > { %552 = shalt.err (!%p549_p2)
}
  0x85   : > { %s618_s19 = smov 32   ;;  %s619_s15 = smov 2  }
  0x86   : > { %409 = dma.vmem_to_hbm [thread:$0]  (%p878_p13), %s807_s22, 64, %s812_s27, %s266_s30, %s618_s19, %s618_s19, %s619_s15  }
  0x87 PF: > { %s295_s0 = sand.u32 1, %s591_s9   ;;  %p879_p6 = scmp.ne.s32.totalorder %s872_s21, 0 }
  0x88   : > { %p880_p1 = scmp.ge.s32.totalorder %s611_s14, 2  ;;  %s296_s18 = scalar_lea.sflag [#allocation4], %s295_s0 }
  0x8a   : > { %p420_p7 = pnand %p880_p1, %p879_p6 }
  0x8c   : > { %586 = dma.done.wait (!%p420_p7), %s296_s18, 64  }
  0x8d   : > { %588 = vsyncadd (!%p420_p7), %s296_s18, 4294967232  ;;  %s19_s14 = sadd.s32 1, %s611_s14   ;;  %s881_s9 = smov %s595_s10 }
  0x8e   : > { %p16_p12 = scmp.ge.s32.totalorder %s19_s14, 4   ;;  %s882_s10 = smov %s599_s11 }
  0x8f   : > { %s883_s11 = smov %s736_s4  ;;  %s884_s12 = smov %s607_s13 }
  0x90   : > { %s885_s13 = smov %s887_s25  ;;  %18 = sbr.rel (!%p16_p12) target bundleno = 9 (0x9), region = 82 }
  0x97   :  { %301 = vsyncpa [#allocation3], 1 }
  0x98   :  { %303 = vsyncpa [#allocation3 + $0x1], 1 }
  0x99   :  { %304 = vsyncpa [#allocation4], 1 }
  0x9a   :  { %306 = vsyncpa [#allocation4 + $0x1], 1 }
  0x9b   :  { %307 = vsyncpa [#allocation5], 1 }
  0x9c   :  { %309 = vsyncpa [#allocation5 + $0x1], 1 }

</bundles_post_ra>
